<compile_context>
chip_gen: v6e
topology: v6e:2x2x1
jax: 0.10.0
libtpu: 0.0.40
codegen_flags: <defaults>
</compile_context>

<pallas_src>
import math

import jax
import jax.numpy as jnp
from jax.experimental import pallas as pl
from jax.experimental.pallas import tpu as pltpu

HIDDEN = 64  # fixed by the PyTorch module definition


def _encoder_kernel(x_ref, w1_ref, b1_ref, w2_ref, b2_ref, out_ref):
    """out = ReLU(x @ W1 + b1) @ W2 + b2  (bf16 MXU operands, f32 accumulation)."""
    x = x_ref[...].astype(jnp.bfloat16)                 # in-kernel f32->bf16 cast (VPU, hidden under DMA)
    h = jnp.dot(x, w1_ref[...], preferred_element_type=jnp.float32)
    h = jnp.maximum(h + b1_ref[...], 0.0)               # bias + ReLU in f32 (VPU)
    y = jnp.dot(h.astype(jnp.bfloat16), w2_ref[...],
                preferred_element_type=jnp.float32) + b2_ref[...]
    out_ref[...] = y.astype(out_ref.dtype)


def _cdiv(a, b):
    return -(-a // b)


def _round_up(a, m):
    return _cdiv(a, m) * m


def d4rl_action_encoder_forward(x, params, *, tile_m=4096, out_dtype=jnp.float32):
    """Pallas forward for D4RLActionEncoder.

    x:      [batch, action_size] float32
    params: dict with 'w1' [action_size, 64], 'b1' [64],
                      'w2' [64, embedding_size], 'b2' [embedding_size]
    Returns [batch, embedding_size] (out_dtype, default float32).
    """
    batch, action_size = x.shape
    hidden = params["w1"].shape[1]
    emb = params["w2"].shape[1]

    # --- row grouping so the output last dim is a multiple of 128 lanes ----------
    G = 128 // math.gcd(emb, 128) if emb < 128 else 1
    if G > 1 and (batch % G != 0 or G * hidden > 4096 or G * action_size > 4096):
        G = 1  # fallback: ungrouped path (correct, just lane-sparse stores)

    w1 = params["w1"].astype(jnp.bfloat16)
    w2 = params["w2"].astype(jnp.bfloat16)
    b1 = params["b1"].astype(jnp.float32)
    b2 = params["b2"].astype(jnp.float32)
    if G > 1:
        eye = jnp.eye(G, dtype=jnp.bfloat16)
        w1 = jnp.kron(eye, w1)                      # (G*action_size, G*hidden) block-diag
        w2 = jnp.kron(eye, w2)                      # (G*hidden,      G*emb)    block-diag
        b1 = jnp.tile(b1, G)
        b2 = jnp.tile(b2, G)
        x = x.reshape(batch // G, G * action_size)  # free row-major regrouping
    b1 = b1.reshape(1, -1)
    b2 = b2.reshape(1, -1)

    m_rows, k_in = x.shape
    n_out = G * emb

    # --- batch tiling (in grouped rows) -------------------------------------------
    # Big tiles amortize the ~0.35us/grid-step overhead; cap so grid >= 2 when there
    # is enough work (both v7x TensorCores get a share; harmless on v5e/v6e).
    desired = max(8, (tile_m // G) // 8 * 8)
    half = _round_up(_cdiv(m_rows, 2), 8)
    tm = min(desired, half)
    if tm >= m_rows:
        tm = m_rows                                  # single full block
    grid = _cdiv(m_rows, tm)                         # ragged last block masked by Pallas

    # Weights / biases: full blocks, same block every grid step -> VMEM-resident.
    resident = lambda a: pl.BlockSpec(a.shape, lambda i: (0,) * a.ndim)

    flops = 2 * batch * (action_size * hidden + hidden * emb)
    bytes_accessed = (x.size * 4
                      + batch * emb * jnp.dtype(out_dtype).itemsize
                      + w1.size * 2 + w2.size * 2 + (b1.size + b2.size) * 4)

    out = pl.pallas_call(
        _encoder_kernel,
        out_shape=jax.ShapeDtypeStruct((m_rows, n_out), out_dtype),
        grid=(grid,),
        in_specs=[
            pl.BlockSpec((tm, k_in), lambda i: (i, 0)),   # x: streamed over batch
            resident(w1), resident(b1),
            resident(w2), resident(b2),
        ],
        out_specs=pl.BlockSpec((tm, n_out), lambda i: (i, 0)),
        compiler_params=pltpu.CompilerParams(
            dimension_semantics=("parallel",)),           # shard batch across TCs (v7x)
        cost_estimate=pl.CostEstimate(
            flops=int(flops), transcendentals=0, bytes_accessed=int(bytes_accessed)),
    )(x, w1, b1, w2, b2)

    return out.reshape(batch, emb)                        # free: row-major metadata only


def init_params(key, action_size, embedding_size):
    """Deterministic synthetic init matching PyTorch nn.Linear uniform ranges."""
    ks = jax.random.split(key, 4)

    def lin(kw, kb, fan_in, fan_out):
        bound = 1.0 / jnp.sqrt(fan_in)
        w = jax.random.uniform(kw, (fan_in, fan_out), jnp.float32, -bound, bound)
        b = jax.random.uniform(kb, (fan_out,), jnp.float32, -bound, bound)
        return w, b

    w1, b1 = lin(ks[0], ks[1], action_size, HIDDEN)
    w2, b2 = lin(ks[2], ks[3], HIDDEN, embedding_size)
    return dict(w1=w1, b1=b1, w2=w2, b2=b2)


def _reference(x, p):
    h = jnp.maximum(x @ p["w1"] + p["b1"], 0.0)
    return h @ p["w2"] + p["b2"]


def _check(x, params, emb, **kw):
    out = d4rl_action_encoder_forward(x, params, **kw)
    jax.block_until_ready(out)
    ref = _reference(x, params)
    assert out.shape == (x.shape[0], emb), "bad output shape"
    # Kernel feeds the MXU bf16 operands (f32 accumulation); compare against the
    # f32 reference with a tolerance covering the bf16 operand rounding.
    assert jnp.allclose(out, ref, atol=5e-2, rtol=5e-2), "encoder output mismatch"


if __name__ == "__main__":
    key = jax.random.PRNGKey(0)
    k_x, k_p = jax.random.split(key)

    batch, action_size, embedding_size = 8, 6, 16
    params = init_params(k_p, action_size, embedding_size)

    # Main small example (group-aligned -> lane-dense grouped path, single block).
    x = jax.random.normal(k_x, (batch, action_size), jnp.float32)
    _check(x, params, embedding_size)

    # Multi-step grid (grid >= 2, ragged-friendly path).
    x2 = jax.random.normal(k_x, (256, action_size), jnp.float32)
    _check(x2, params, embedding_size, tile_m=16)

    # Non-group-aligned batch -> ungrouped fallback path (no padding, no copies).
    x3 = jax.random.normal(k_x, (5, action_size), jnp.float32)
    _check(x3, params, embedding_size)

    print("KERNEL_OK")
</pallas_src>

<mosaic_0001>
module attributes {stable_mosaic.version = 11 : i64} {
  func.func @_encoder_kernel(%arg0: i32, %arg1: memref<1x48xf32, #tpu.memory_space<vmem>>, %arg2: memref<48x512xbf16, #tpu.memory_space<vmem>>, %arg3: memref<1x512xf32, #tpu.memory_space<vmem>>, %arg4: memref<512x128xbf16, #tpu.memory_space<vmem>>, %arg5: memref<1x128xf32, #tpu.memory_space<vmem>>, %arg6: memref<1x128xf32, #tpu.memory_space<vmem>>) attributes {dimension_semantics = [#tpu.dimension_semantics<parallel>], iteration_bounds = array<i64: 1>, scalar_prefetch = 0 : i64, scratch_operands = 0 : i64, tpu.core_type = #tpu.core_type<tc>, window_params = [{transform_indices = @transform_0, window_bounds = array<i64: 1, 48>}, {pipeline_mode = #tpu.pipeline_mode<synchronous>, transform_indices = @transform_1, window_bounds = array<i64: 48, 512>}, {pipeline_mode = #tpu.pipeline_mode<synchronous>, transform_indices = @transform_2, window_bounds = array<i64: 1, 512>}, {pipeline_mode = #tpu.pipeline_mode<synchronous>, transform_indices = @transform_3, window_bounds = array<i64: 512, 128>}, {pipeline_mode = #tpu.pipeline_mode<synchronous>, transform_indices = @transform_4, window_bounds = array<i64: 1, 128>}, {transform_indices = @transform_5, window_bounds = array<i64: 1, 128>}]} {
    %c0 = arith.constant 0 : index
    %c0_0 = arith.constant 0 : index
    %0 = vector.load %arg1[%c0, %c0_0] : memref<1x48xf32, #tpu.memory_space<vmem>>, vector<1x48xf32>
    %1 = arith.truncf %0 : vector<1x48xf32> to vector<1x48xbf16>
    %c0_1 = arith.constant 0 : index
    %c0_2 = arith.constant 0 : index
    %2 = vector.load %arg2[%c0_1, %c0_2] : memref<48x512xbf16, #tpu.memory_space<vmem>>, vector<48x512xbf16>
    %cst = arith.constant dense<0.000000e+00> : vector<1x512xf32>
    %3 = tpu.matmul %1, %2, %cst {dimension_numbers = #tpu.dot_dimension_numbers<[1], [0], [0], [1], [0, 0, 1, 1], [], []>} : vector<1x48xbf16>, vector<48x512xbf16>, vector<1x512xf32> -> vector<1x512xf32>
    %c0_3 = arith.constant 0 : index
    %c0_4 = arith.constant 0 : index
    %4 = vector.load %arg3[%c0_3, %c0_4] : memref<1x512xf32, #tpu.memory_space<vmem>>, vector<1x512xf32>
    %5 = arith.addf %3, %4 : vector<1x512xf32>
    %cst_5 = arith.constant 0.000000e+00 : f32
    %6 = vector.broadcast %cst_5 : f32 to vector<1x512xf32>
    %7 = arith.maximumf %5, %6 : vector<1x512xf32>
    %8 = arith.truncf %7 : vector<1x512xf32> to vector<1x512xbf16>
    %c0_6 = arith.constant 0 : index
    %c0_7 = arith.constant 0 : index
    %9 = vector.load %arg4[%c0_6, %c0_7] : memref<512x128xbf16, #tpu.memory_space<vmem>>, vector<512x128xbf16>
    %cst_8 = arith.constant dense<0.000000e+00> : vector<1x128xf32>
    %10 = tpu.matmul %8, %9, %cst_8 {dimension_numbers = #tpu.dot_dimension_numbers<[1], [0], [0], [1], [0, 0, 1, 1], [], []>} : vector<1x512xbf16>, vector<512x128xbf16>, vector<1x128xf32> -> vector<1x128xf32>
    %c0_9 = arith.constant 0 : index
    %c0_10 = arith.constant 0 : index
    %11 = vector.load %arg5[%c0_9, %c0_10] : memref<1x128xf32, #tpu.memory_space<vmem>>, vector<1x128xf32>
    %12 = arith.addf %10, %11 : vector<1x128xf32>
    %c0_11 = arith.constant 0 : index
    %c0_12 = arith.constant 0 : index
    %13 = vector.load %arg6[%c0_11, %c0_12] : memref<1x128xf32, #tpu.memory_space<vmem>>, vector<1x128xf32>
    tpu.vector_store %arg6[%c0_11, %c0_12], %12 {strides = array<i32>} : memref<1x128xf32, #tpu.memory_space<vmem>>, vector<1x128xf32>,
    return
  }
  func.func @transform_0(%arg0: i32) -> (i32, i32) {
    %c0_i32 = arith.constant 0 : i32
    %c0_i32_0 = arith.constant 0 : i32
    return %arg0, %c0_i32 : i32, i32
  }
  func.func @transform_1(%arg0: i32) -> (i32, i32) {
    %c0_i32 = arith.constant 0 : i32
    %c0_i32_0 = arith.constant 0 : i32
    %c0_i32_1 = arith.constant 0 : i32
    return %c0_i32, %c0_i32_0 : i32, i32
  }
  func.func @transform_2(%arg0: i32) -> (i32, i32) {
    %c0_i32 = arith.constant 0 : i32
    %c0_i32_0 = arith.constant 0 : i32
    %c0_i32_1 = arith.constant 0 : i32
    return %c0_i32, %c0_i32_0 : i32, i32
  }
  func.func @transform_3(%arg0: i32) -> (i32, i32) {
    %c0_i32 = arith.constant 0 : i32
    %c0_i32_0 = arith.constant 0 : i32
    %c0_i32_1 = arith.constant 0 : i32
    return %c0_i32, %c0_i32_0 : i32, i32
  }
  func.func @transform_4(%arg0: i32) -> (i32, i32) {
    %c0_i32 = arith.constant 0 : i32
    %c0_i32_0 = arith.constant 0 : i32
    %c0_i32_1 = arith.constant 0 : i32
    return %c0_i32, %c0_i32_0 : i32, i32
  }
  func.func @transform_5(%arg0: i32) -> (i32, i32) {
    %c0_i32 = arith.constant 0 : i32
    %c0_i32_0 = arith.constant 0 : i32
    return %arg0, %c0_i32 : i32, i32
  }
}

</mosaic_0001>

<bundles_post_ra>
// kernel: tpu_custom_call.1
= control target key start
LH: loop header
LB: loop body
LE: loop exit
PB: predicated region body
PF: predicated region fallthrough
CT: control target
= control target key end

     0   :  { %10 = vsyncpa [#allocation3], 0  ;;  %s934_s0 = inlined_call_operand.hbm [shape: f32[1,48], index: 0, kind: input, shape index: {}]   ;;  %s935_s1 = inlined_call_operand.hbm [shape: bf16[48,512], index: 1, kind: input, shape index: {}]   ;;  %s936_s2 = inlined_call_operand.hbm [shape: f32[1,512], index: 2, kind: input, shape index: {}]   ;;  %s937_s3 = inlined_call_operand.hbm [shape: bf16[512,128], index: 3, kind: input, shape index: {}]   ;;  %s938_s4 = inlined_call_operand.vmem [shape: f32[1,128], index: 4, kind: input, shape index: {}]   ;;  %s939_s5 = inlined_call_operand.hbm [shape: f32[1,128], index: 5, kind: output, shape index: {}]  }
   0x1   :  { %11 = vsyncpa [#allocation6], 0 }
   0x2   :  { %12 = vsyncpa [#allocation9], 0 }
   0x3   :  { %13 = vsyncpa [#allocation4], 0  ;;  %s876_s18 = smov [#allocation5]  }
   0x4   :  { %s29_s19 = sshll.u32 %s876_s18, 4  ;;  %s30_s19 = int_to_ptr.vmem [resolvable:$true] %s29_s19 }
   0x5   :  { %s776_s20 = scalar_lea.vmem %s30_s19, 1536  ;;  %p781_p1 = scmp.lt.s32.totalorder %s30_s19, %s30_s19 }
   0x6   :  { %p777_p0 = scmp.ne.s32.totalorder %s30_s19, %s776_s20  ;;  %p782_p2 = scmp.lt.s32.totalorder %s776_s20, %s776_s20 }
   0x8   :  { %p783_p3 = por %p782_p2, %p781_p1 }
   0xa   :  { %p784_p4 = pnand %p783_p3, %p777_p0 }
   0xc   :  { %787 = shalt.err (!%p784_p4)
}
   0xd   :  { %s877_s21 = smov 256   ;;  %s878_s22 = smov 16  }
   0xe   :  { %35 = dma.hbm_to_vmem [thread:$0]  %s935_s1, 1536, %s30_s19, [#allocation6], %s877_s21, %s877_s21, %s878_s22  }
   0xf   :  { %s879_s25 = smov [#allocation2]   ;;  %s880_s27 = smov [#allocation7]  }
  0x10   :  { %s20_s26 = sshll.u32 %s879_s25, 4  ;;  %s42_s28 = sshll.u32 %s880_s27, 4  ;;  %s21_s26 = int_to_ptr.vmem [resolvable:$true] %s20_s26  ;;  %s43_s28 = int_to_ptr.vmem [resolvable:$true] %s42_s28 }
  0x11   :  { %s796_s29 = scalar_lea.vmem %s21_s26, 16  ;;  %s800_s30 = scalar_lea.vmem %s21_s26, 32 }
  0x12   :  { %p797_p5 = scmp.ne.s32.totalorder %s21_s26, %s796_s29  ;;  %p801_p6 = scmp.lt.s32.totalorder %s21_s26, %s21_s26 }
  0x13   :  { %p802_p7 = scmp.lt.s32.totalorder %s800_s30, %s796_s29 }
  0x15   :  { %p803_p8 = por %p802_p7, %p801_p6 }
  0x17   :  { %p804_p9 = pnand %p803_p8, %p797_p5 }
  0x19   :  { %807 = shalt.err (!%p804_p9)
}
  0x1a   :  { %23 = dma.hbm_to_vmem [thread:$0]  %s934_s0, 16, %s21_s26, [#allocation3]  }
  0x1b   :  { %s816_s8 = scalar_lea.vmem %s43_s28, 64  ;;  %p821_p11 = scmp.lt.s32.totalorder %s43_s28, %s43_s28 }
  0x1c   :  { %p817_p10 = scmp.ne.s32.totalorder %s43_s28, %s816_s8  ;;  %p822_p12 = scmp.lt.s32.totalorder %s816_s8, %s816_s8 }
  0x1e   :  { %p823_p13 = por %p822_p12, %p821_p11 }
  0x20   :  { %p824_p0 = pnand %p823_p13, %p817_p10 }
  0x22   :  { %827 = shalt.err (!%p824_p0)
}
  0x23   :  { %45 = dma.hbm_to_vmem [thread:$0]  %s936_s2, 64, %s43_s28, [#allocation6]  }
  0x24   :  { %s881_s10 = smov [#allocation8]  }
  0x25   :  { %s51_s11 = sshll.u32 %s881_s10, 4  ;;  %s52_s11 = int_to_ptr.vmem [resolvable:$true] %s51_s11 }
  0x26   :  { %s836_s12 = scalar_lea.vmem %s52_s11, 4096  ;;  %p841_p2 = scmp.lt.s32.totalorder %s52_s11, %s52_s11 }
  0x27   :  { %p837_p1 = scmp.ne.s32.totalorder %s52_s11, %s836_s12  ;;  %p842_p3 = scmp.lt.s32.totalorder %s836_s12, %s836_s12 }
  0x29   :  { %p843_p4 = por %p842_p3, %p841_p2 }
  0x2b   :  { %p844_p5 = pnand %p843_p4, %p837_p1 }
  0x2d   :  { %847 = shalt.err (!%p844_p5)
}
  0x2e   :  { %s882_s0 = smov 64   ;;  %s883_s13 = smov 4  }
  0x2f   :  { %57 = dma.hbm_to_vmem [thread:$0]  %s937_s3, 4096, %s52_s11, [#allocation9], %s882_s0, %s882_s0, %s883_s13  }
  0x30   :  { %868 = dma.done.wait [#allocation3], 16  }
  0x31   :  { %869 = vsyncadd [#allocation3], 4294967280 }
  0x32   :  { %870 = dma.done.wait [#allocation6], 1600  }
  0x33   :  { %871 = vsyncadd [#allocation6], 4294965696 }
  0x34   :  { %872 = dma.done.wait [#allocation9], 4096  }
  0x35   :  { %873 = vsyncadd [#allocation9], 4294963200  ;;  %v884_v0 = vmov 0   ;;  %v718_v1 = vld [vmem:[#allocation5 + $0x44] ss:$16 sps:$4 sm:$0xff]   ;;  %v736_v14 = vld [vmem:[#allocation8 + $0x78] sm:$0xff]   ;;  %v149_v47 = vlaneseq }
  0x36   :  { %205 = vmatprep.mubr.bf16.mxu0 %v884_v0  ;;  %246 = vmatprep.mubr.bf16.mxu1 %v884_v0  ;;  %v720_v2 = vld [vmem:[#allocation5 + $0x4c] ss:$16 sps:$4 sm:$0xff]   ;;  %v722_v3 = vld [vmem:[#allocation5 + $0x40] ss:$16 sps:$4 sm:$0xff]   ;;  %v723_v4 = vld [vmem:[#allocation5 + $0x48] ss:$16 sps:$4 sm:$0xff]  }
  0x37   :  { %183 = vmatprep.subr.bf16.mxu0 %v718_v1  ;;  %224 = vmatprep.subr.bf16.mxu1 %v720_v2  ;;  %v724_v5 = vld [vmem:[#allocation5 + $0x24] ss:$16 sps:$4 sm:$0xff]   ;;  %v726_v6 = vld [vmem:[#allocation5 + $0x2c] ss:$16 sps:$4 sm:$0xff]   ;;  %v728_v7 = vld [vmem:[#allocation5 + $0x20] ss:$16 sps:$4 sm:$0xff]  }
  0x38   :  { %184 = vmatpush1.bf16.msra.mxu0 %v722_v3  ;;  %225 = vmatpush1.bf16.msra.mxu1 %v723_v4  ;;  %v729_v8 = vld [vmem:[#allocation5 + $0x28] ss:$16 sps:$4 sm:$0xff]   ;;  %v730_v9 = vld [vmem:[#allocation5 + $0x4] ss:$16 sps:$4 sm:$0xff]   ;;  %v732_v10 = vld [vmem:[#allocation5 + $0xc] ss:$16 sps:$4 sm:$0xff]  }
  0x39   :  { %185 = vmatprep.subr.bf16.mxu0 %v724_v5  ;;  %226 = vmatprep.subr.bf16.mxu1 %v726_v6  ;;  %v734_v11 = vld [vmem:[#allocation5] ss:$16 sps:$4 sm:$0xff]   ;;  %v735_v12 = vld [vmem:[#allocation5 + $0x8] ss:$16 sps:$4 sm:$0xff]   ;;  %v73_v13 = vld [vmem:[#allocation2] sm:$0x1] }
  0x3a   :  { %v737_v15 = vld [vmem:[#allocation8 + $0xf8] sm:$0xff]   ;;  %v74_v16 = vpack.c.bf16 %v73_v13, %v73_v13  ;;  %vm169_vm0 = vcmask 392192   ;;  %v740_v19 = vld [vmem:[#allocation8 + $0x70] sm:$0xff]   ;;  %v744_v23 = vld [vmem:[#allocation8 + $0x68] sm:$0xff]   ;;  %v150_v48 = vshrl.u32 %v149_v47, 7  ;;  %s885_s16 = smov [#allocation10]  }
  0x3b   :  { %v738_v17 = vld [vmem:[#allocation8 + $0x38] sm:$0xff]   ;;  %v741_v20 = vld [vmem:[#allocation8 + $0xf0] sm:$0xff]   ;;  %v745_v24 = vld [vmem:[#allocation8 + $0xe8] sm:$0xff]   ;;  %s607_s17 = sshll.u32 %s885_s16, 4  ;;  %s608_s17 = int_to_ptr.vmem [resolvable:$true] %s607_s17 }
  0x3c   :  { %186 = vmatpush1.bf16.msra.mxu0 %v728_v7  ;;  %227 = vmatpush1.bf16.msra.mxu1 %v729_v8  ;;  %v739_v18 = vld [vmem:[#allocation8 + $0xb8] sm:$0xff]   ;;  %v742_v21 = vld [vmem:[#allocation8 + $0x30] sm:$0xff]   ;;  %v746_v25 = vld [vmem:[#allocation8 + $0x28] sm:$0xff]   ;;  %v151_v49 = vsub.s32 0, %v150_v48  ;;  %v159_v50 = vsub.s32 2, %v150_v48  ;;  %v155_v52 = vsub.s32 1, %v150_v48  ;;  %p853_p7 = scmp.lt.s32.totalorder %s608_s17, %s608_s17 }
  0x3d   :  { %187 = vmatprep.subr.bf16.mxu0 %v730_v9  ;;  %228 = vmatprep.subr.bf16.mxu1 %v732_v10  ;;  %v743_v22 = vld [vmem:[#allocation8 + $0xb0] sm:$0xff]   ;;  %v747_v26 = vld [vmem:[#allocation8 + $0xa8] sm:$0xff]   ;;  %v748_v27 = vld [vmem:[#allocation8 + $0x60] sm:$0xff]   ;;  %v163_v53 = vsub.s32 3, %v150_v48  ;;  %s848_s18 = scalar_lea.vmem %s608_s17, 16  ;;  %s852_s19 = scalar_lea.vmem %s608_s17, 32 }
  0x3e   :  { %v749_v28 = vld [vmem:[#allocation8 + $0xe0] sm:$0xff]   ;;  %v752_v31 = vld [vmem:[#allocation8 + $0x58] sm:$0xff]   ;;  %v756_v35 = vld [vmem:[#allocation8 + $0x50] sm:$0xff]   ;;  %p849_p6 = scmp.ne.s32.totalorder %s608_s17, %s848_s18  ;;  %p854_p8 = scmp.lt.s32.totalorder %s852_s19, %s848_s18 }
  0x3f   :  { %v750_v29 = vld [vmem:[#allocation8 + $0x20] sm:$0xff]   ;;  %v753_v32 = vld [vmem:[#allocation8 + $0xd8] sm:$0xff]   ;;  %v757_v36 = vld [vmem:[#allocation8 + $0xd0] sm:$0xff]  }
  0x40   :  { %188 = vmatpush1.bf16.msra.mxu0 %v734_v11  ;;  %229 = vmatpush1.bf16.msra.mxu1 %v735_v12  ;;  %v751_v30 = vld [vmem:[#allocation8 + $0xa0] sm:$0xff]   ;;  %v754_v33 = vld [vmem:[#allocation8 + $0x18] sm:$0xff]   ;;  %v758_v37 = vld [vmem:[#allocation8 + $0x10] sm:$0xff]   ;;  %p855_p9 = por %p854_p8, %p853_p7 }
  0x41   :  { %664 = vmatprep.subr.bf16.mxu0 %v736_v14  ;;  %686 = vmatprep.subr.bf16.mxu1 %v737_v15  ;;  %v755_v34 = vld [vmem:[#allocation8 + $0x98] sm:$0xff]   ;;  %v759_v38 = vld [vmem:[#allocation8 + $0x90] sm:$0xff]   ;;  %v760_v39 = vld [vmem:[#allocation8 + $0x48] sm:$0xff]  }
  0x42   :  { %v761_v40 = vld [vmem:[#allocation8 + $0xc8] sm:$0xff]   ;;  %v764_v43 = vld [vmem:[#allocation8 + $0x40] sm:$0xff]   ;;  %v87_v51 = vld [vmem:[#allocation7] sm:$0xf]  ;;  %p856_p10 = pnand %p855_p9, %p849_p6 }
  0x43   :  { %630 = vmatmul.mubr.msk.bf16.vlgmr.msra.gmra.mxu0 %vm169_vm0, %v74_v16  ;;  %631 = vmatmul.mubr.msk.bf16.vlgmr.msra.gmra.mxu1 %vm169_vm0, %v74_v16  ;;  %v762_v41 = vld [vmem:[#allocation8 + $0x8] sm:$0xff]   ;;  %v765_v44 = vld [vmem:[#allocation8 + $0xc0] sm:$0xff]   ;;  %v152_v54 = vrot.slane %v87_v51, %v151_v49  ;;  %v160_v55 = vrot.slane %v87_v51, %v159_v50  ;;  %v156_v56 = vrot.slane %v87_v51, %v155_v52  ;;  %v327_v16 = vld [vmem:[%s938_s4] sm:$0x1] }
  0x44   :  { %665 = vmatpush3.bf16.msra.mxu0 %v738_v17  ;;  %687 = vmatpush3.bf16.msra.mxu1 %v739_v18  ;;  %v763_v42 = vld [vmem:[#allocation8 + $0x88] sm:$0xff]   ;;  %v766_v45 = vld [vmem:[#allocation8] sm:$0xff]   ;;  %v164_v57 = vrot.slane %v87_v51, %v163_v53 }
  0x45   :  { %666 = vmatprep.subr.bf16.mxu0 %v740_v19  ;;  %688 = vmatprep.subr.bf16.mxu1 %v741_v20  ;;  %v767_v46 = vld [vmem:[#allocation8 + $0x80] sm:$0xff]  }
  0x48   :  { %667 = vmatpush3.bf16.msra.mxu0 %v742_v21  ;;  %689 = vmatpush3.bf16.msra.mxu1 %v743_v22 }
  0x49   :  { %668 = vmatprep.subr.bf16.mxu0 %v744_v23  ;;  %690 = vmatprep.subr.bf16.mxu1 %v745_v24 }
  0x4c   :  { %669 = vmatpush3.bf16.msra.mxu0 %v746_v25  ;;  %691 = vmatpush3.bf16.msra.mxu1 %v747_v26 }
  0x4d   :  { %670 = vmatprep.subr.bf16.mxu0 %v748_v27  ;;  %692 = vmatprep.subr.bf16.mxu1 %v749_v28 }
  0x50   :  { %671 = vmatpush3.bf16.msra.mxu0 %v750_v29  ;;  %693 = vmatpush3.bf16.msra.mxu1 %v751_v30 }
  0x51   :  { %672 = vmatprep.subr.bf16.mxu0 %v752_v31  ;;  %694 = vmatprep.subr.bf16.mxu1 %v753_v32 }
  0x54   :  { %673 = vmatpush3.bf16.msra.mxu0 %v754_v33  ;;  %695 = vmatpush3.bf16.msra.mxu1 %v755_v34 }
  0x55   :  { %674 = vmatprep.subr.bf16.mxu0 %v756_v35  ;;  %696 = vmatprep.subr.bf16.mxu1 %v757_v36 }
  0x58   :  { %675 = vmatpush3.bf16.msra.mxu0 %v758_v37  ;;  %697 = vmatpush3.bf16.msra.mxu1 %v759_v38 }
  0x59   :  { %676 = vmatprep.subr.bf16.mxu0 %v760_v39  ;;  %698 = vmatprep.subr.bf16.mxu1 %v761_v40 }
  0x5c   :  { %677 = vmatpush3.bf16.msra.mxu0 %v762_v41  ;;  %699 = vmatpush3.bf16.msra.mxu1 %v763_v42 }
  0x5d   :  { %678 = vmatprep.subr.bf16.mxu0 %v764_v43  ;;  %700 = vmatprep.subr.bf16.mxu1 %v765_v44 }
  0x60   :  { %679 = vmatpush3.bf16.msra.mxu0 %v766_v45  ;;  %701 = vmatpush3.bf16.msra.mxu1 %v767_v46 }
 0x103   :  { %v207_v58 = vpop.f32.mrf.mxu0  ;;  %v248_v59 = vpop.f32.mrf.mxu1 }
 0x104   :  { %v208_v60 = vadd.f32 %v207_v58, %v152_v54  ;;  %v249_v61 = vadd.f32 %v248_v59, %v160_v55 }
 0x105   :  { %v209_v62 = vpop.f32.mrf.mxu0  ;;  %v250_v63 = vpop.f32.mrf.mxu1 }
 0x106   :  { %v257_v0 = vmax.f32 %v249_v61, 0.0  ;;  %v210_v1 = vadd.f32 %v209_v62, %v156_v56  ;;  %v251_v2 = vadd.f32 %v250_v63, %v164_v57  ;;  %v255_v3 = vmax.f32 %v208_v60, 0.0 }
 0x107   :  { %v211_v4 = vpop.f32.mrf.mxu0  ;;  %v252_v5 = vpop.f32.mrf.mxu1 }
 0x108   :  { %v256_v6 = vmax.f32 %v210_v1, 0.0  ;;  %v258_v7 = vmax.f32 %v251_v2, 0.0  ;;  %v261_v8 = vpack.c.bf16 %v257_v0, %v257_v0  ;;  %v259_v13 = vpack.c.bf16 %v255_v3, %v255_v3 }
 0x109   :  { %v212_v9 = vpop.f32.mrf.mxu0  ;;  %v253_v10 = vpop.f32.mrf.mxu1 }
 0x10a   :  { %v260_v11 = vpack.c.bf16 %v256_v6, %v256_v6  ;;  %v262_v12 = vpack.c.bf16 %v258_v7, %v258_v7 }
 0x10c   :  { %552 = vmatprep.mubr.bf16.mxu0 %v260_v11  ;;  %592 = vmatprep.mubr.bf16.mxu1 %v262_v12 }
 0x10d   :  { %553 = vmatmul.mubr.bf16.vlgmr.msra.gmra.mxu0 %v259_v13  ;;  %593 = vmatmul.mubr.bf16.vlgmr.msra.gmra.mxu1 %v261_v8 }
 0x1cd   :  { %v680_v14 = vpop.f32.mrf.mxu0  ;;  %v702_v15 = vpop.f32.mrf.mxu1 }
 0x1cf   :  { %v681_v17 = vpop.f32.mrf.mxu0  ;;  %v703_v18 = vpop.f32.mrf.mxu1 }
 0x1d0   :  { %v682_v19 = vadd.f32 %v681_v17, %v680_v14  ;;  %v704_v23 = vadd.f32 %v703_v18, %v702_v15 }
 0x1d1   :  { %v683_v20 = vpop.f32.mrf.mxu0  ;;  %v705_v21 = vpop.f32.mrf.mxu1 }
 0x1d2   :  { %v555_v22 = vadd.f32 %v682_v19, %v327_v16 }
 0x1d3   :  { %v684_v24 = vpop.f32.mrf.mxu0  ;;  %v706_v25 = vpop.f32.mrf.mxu1 }
 0x1d4   :  { %v595_v26 = vadd.f32 %v704_v23, %v555_v22 }
 0x1d6   :  { %600 = vst [vmem:[#allocation10] sm:$0x1] %v595_v26 }
 0x1d7   :  { %859 = shalt.err (!%p856_p10)
}
 0x1d8   :  { %610 = dma.vmem_to_hbm [thread:$0]  %s608_s17, 16, %s939_s5, [#allocation4]  }
 0x1d9   :  { %874 = dma.done.wait [#allocation4], 16  }
 0x1da   :  { %875 = vsyncadd [#allocation4], 4294967280 }
 0x1db   :  { %614 = vsyncpa [#allocation3], 1 }
 0x1dc   :  { %615 = vsyncpa [#allocation6], 1 }
 0x1dd   :  { %616 = vsyncpa [#allocation9], 1 }
 0x1de   :  { %617 = vsyncpa [#allocation4], 1 }

</bundles_post_ra>
